<compile_context>
chip_gen: v7x
topology: tpu7x:2x2x1
jax: 0.10.0
libtpu: 0.0.40
codegen_flags: <defaults>
</compile_context>

<pallas_src>
import functools

import jax
import jax.numpy as jnp
from jax import lax
from jax.experimental import pallas as pl
from jax.experimental.pallas import tpu as pltpu

_LANES = 128
_ACC_ROWS = 64                 # wide accumulator: 8 independent f32 vreg chains
_TARGET_BLOCK_BYTES = 8 << 20  # ~8 MiB input block (f32: 16384 rows, bf16: 32768)
_NUM_PARALLEL = 2              # leading 'parallel' grid axis (both TCs on v7x)
_SMALL_N = 1 << 15             # below this, kernel-launch overhead dwarfs the work


def _round_up(a, b):
    return (a + b - 1) // b * b


def _choose_block_rows(rows, itemsize):
    """Pick block rows by bytes (~8 MiB), keeping >=2 steps per core on 2-TC parts."""
    target = max(
        _ACC_ROWS,
        (_TARGET_BLOCK_BYTES // (_LANES * itemsize)) // _ACC_ROWS * _ACC_ROWS)
    if rows >= 4 * target:
        big = target
    else:
        # Mid-sized input: shrink so a 2-TC chip (v7x) still gets >= 2 j-steps
        # per core instead of idling one TensorCore.
        big = max(_ACC_ROWS, _round_up(pl.cdiv(rows, 4), _ACC_ROWS))
        big = min(big, target)
    # Never exceed the (8-row padded) input itself.
    return min(big, _round_up(rows, 8))


def _partial_sum_kernel(x_ref, o_ref, *, block_rows, acc_rows, valid_rows,
                        needs_mask):
    """Accumulate per-p partial sums of the tiles into a (acc_rows,128) output."""
    p = pl.program_id(0)
    j = pl.program_id(1)
    nj = pl.num_programs(1)

    @pl.when(j == 0)
    def _():
        o_ref[...] = jnp.zeros_like(o_ref)

    tile = x_ref[...].astype(jnp.float32)
    groups = block_rows // acc_rows

    def _accumulate(t):
        # (block_rows,128) -> (groups, acc_rows, 128) matches the native (8,128)
        # tiling (free reshape); the axis-0 sum is acc_rows/8 independent vreg
        # add chains feeding the 4 VALU slots, well under the block DMA time.
        o_ref[...] += t.reshape(groups, acc_rows, _LANES).sum(axis=0)

    if needs_mask:
        # Logical (un-clamped) block index; rows past `valid_rows` (grid-level
        # ragged tail or clamped duplicate blocks) contribute zero.
        g = p * nj + j
        remaining = valid_rows - g * block_rows

        @pl.when(remaining >= block_rows)       # fully-valid block: no mask cost
        def _():
            _accumulate(tile)

        @pl.when(remaining < block_rows)        # ragged tail / clamped duplicate
        def _():
            row_id = lax.broadcasted_iota(jnp.int32, (block_rows, 1), 0)
            _accumulate(jnp.where(row_id < remaining, tile, 0.0))
    else:
        _accumulate(tile)


def new_generator_loss(d_out_for_generated, current_epoch=None, tb_writer=None,
                       *, force_pallas=False):
    """JAX/Pallas equivalent of newGeneratorLoss.forward: -mean(D_out)."""
    # TODO(synk): tb_writer.add_scalar (TensorBoard logging) is a host-side
    # side effect with no Pallas equivalent; intentionally skipped.
    x = jnp.asarray(d_out_for_generated)
    n_true = int(x.size)
    out_dtype = x.dtype if jnp.issubdtype(x.dtype, jnp.floating) else jnp.float32

    if n_true == 0:
        return jnp.asarray(jnp.nan, out_dtype)
    if n_true >= (1 << 37):
        # Keeps the in-kernel int32 block-offset arithmetic far from overflow.
        raise ValueError("input too large for int32 block-index arithmetic")

    # Fast path: tiny inputs -- XLA's fused reduce beats any kernel launch.
    if n_true < _SMALL_N and not force_pallas:
        return (-jnp.mean(x.astype(jnp.float32))).astype(out_dtype)

    # Flatten in the NATIVE dtype (accumulation is f32 inside the kernel, so
    # bf16/fp16 inputs keep half the HBM traffic). Note: f64 inputs (if x64 is
    # enabled) are accumulated in f32, matching the GAN-loss tolerance.
    flat = jnp.ravel(x)                          # free (layout-preserving) reshape
    itemsize = jnp.dtype(flat.dtype).itemsize

    rem = n_true % _LANES
    aligned_n = n_true - rem
    # <=127-element ragged tail summed in the wrapper: no padded full-array copy.
    tail_sum = (jnp.sum(flat[aligned_n:].astype(jnp.float32))
                if rem else jnp.float32(0.0))

    if aligned_n == 0:
        total = tail_sum
    else:
        rows = aligned_n // _LANES
        x2d = (flat if rem == 0 else flat[:aligned_n]).reshape(rows, _LANES)

        block_rows = _choose_block_rows(rows, itemsize)
        acc_rows = _ACC_ROWS if block_rows % _ACC_ROWS == 0 else 8
        num_blocks = pl.cdiv(rows, block_rows)
        p_axis = max(1, min(_NUM_PARALLEL, num_blocks))
        j_axis = pl.cdiv(num_blocks, p_axis)
        needs_mask = (p_axis * j_axis * block_rows) != rows

        def in_index_map(p, j):
            # Clamp so the auto-DMA never walks past the array; logically
            # out-of-range blocks are zeroed by the in-kernel row mask.
            return (jnp.minimum(p * j_axis + j, num_blocks - 1), 0)

        partials = pl.pallas_call(
            functools.partial(_partial_sum_kernel, block_rows=block_rows,
                              acc_rows=acc_rows, valid_rows=rows,
                              needs_mask=needs_mask),
            out_shape=jax.ShapeDtypeStruct((p_axis * acc_rows, _LANES),
                                           jnp.float32),
            grid_spec=pltpu.PrefetchScalarGridSpec(
                num_scalar_prefetch=0,
                grid=(p_axis, j_axis),
                in_specs=[pl.BlockSpec((block_rows, _LANES), in_index_map)],
                out_specs=pl.BlockSpec((acc_rows, _LANES), lambda p, j: (p, 0)),
            ),
            compiler_params=pltpu.CompilerParams(
                dimension_semantics=("parallel", "arbitrary"),
                vmem_limit_bytes=48 * 1024 * 1024,
            ),
        )(x2d)
        total = jnp.sum(partials) + tail_sum

    return (-total / jnp.float32(n_true)).astype(out_dtype)


if __name__ == "__main__":
    key = jax.random.PRNGKey(0)
    k1, k2, k3, k4 = jax.random.split(key, 4)

    # Small PatchGAN-style discriminator output (matches the module's usage).
    d_small = jax.random.normal(k1, (2, 4, 16, 16), dtype=jnp.float32)
    # Medium maps exercising the Pallas path: exact tiling and ragged tails.
    d_exact = jax.random.normal(k2, (2, 4, 128, 128), dtype=jnp.float32)
    d_ragged = jax.random.normal(k3, (5, 3, 133, 132), dtype=jnp.float32)
    d_bf16 = jax.random.normal(k4, (3, 4, 65, 67), dtype=jnp.float32).astype(
        jnp.bfloat16)

    cases = [
        ("small_fastpath", d_small, {}, 1e-5, 5e-6),
        ("small_forced_pallas", d_small, {"force_pallas": True}, 1e-5, 5e-6),
        ("exact_tiles", d_exact, {}, 1e-5, 5e-6),
        ("ragged_tail", d_ragged, {}, 1e-5, 5e-6),
        ("bf16_ragged", d_bf16, {}, 2e-2, 2e-3),
    ]
    for name, d_out, kw, rtol, atol in cases:
        g_loss = new_generator_loss(d_out, current_epoch=0, **kw)
        g_loss = jax.block_until_ready(g_loss)
        assert g_loss.dtype == d_out.dtype, (name, g_loss.dtype, d_out.dtype)
        ref = -jnp.mean(d_out.astype(jnp.float32))
        ok = jnp.allclose(g_loss.astype(jnp.float32), ref, rtol=rtol, atol=atol)
        assert ok, (name, g_loss, ref)

    print("KERNEL_OK")
</pallas_src>

<mosaic_0001>
module attributes {stable_mosaic.version = 11 : i64} {
  func.func @_partial_sum_kernel(%arg0: i32, %arg1: i32, %arg2: memref<16x128xf32, #tpu.memory_space<vmem>>, %arg3: memref<8x128xf32, #tpu.memory_space<vmem>>) attributes {dimension_semantics = [#tpu.dimension_semantics<parallel>, #tpu.dimension_semantics<arbitrary>], iteration_bounds = array<i64: 1, 1>, scalar_prefetch = 0 : i64, scratch_operands = 0 : i64, tpu.core_type = #tpu.core_type<tc>, window_params = [{transform_indices = @transform_0, window_bounds = array<i64: 16, 128>}, {transform_indices = @transform_1, window_bounds = array<i64: 8, 128>}]} {
    %c0_i32 = arith.constant 0 : i32
    %0 = arith.cmpi eq, %arg1, %c0_i32 : i32
    %1 = arith.extui %0 : i1 to i32
    %c0_i32_0 = arith.constant 0 : i32
    %2 = arith.cmpi ne, %1, %c0_i32_0 : i32
    scf.if %2 {
      %cst_6 = arith.constant 0.000000e+00 : f32
      %9 = vector.broadcast %cst_6 : f32 to vector<8x128xf32>
      %c0_7 = arith.constant 0 : index
      %c0_8 = arith.constant 0 : index
      %10 = vector.load %arg3[%c0_7, %c0_8] : memref<8x128xf32, #tpu.memory_space<vmem>>, vector<8x128xf32>
      tpu.vector_store %arg3[%c0_7, %c0_8], %9 {strides = array<i32>} : memref<8x128xf32, #tpu.memory_space<vmem>>, vector<8x128xf32>,
    } else {
    }
    %c0 = arith.constant 0 : index
    %c0_1 = arith.constant 0 : index
    %3 = vector.load %arg2[%c0, %c0_1] : memref<16x128xf32, #tpu.memory_space<vmem>>, vector<16x128xf32>
    %c0_2 = arith.constant 0 : index
    %c0_3 = arith.constant 0 : index
    %4 = vector.load %arg3[%c0_2, %c0_3] : memref<8x128xf32, #tpu.memory_space<vmem>>, vector<8x128xf32>
    %5 = vector.shape_cast %3 : vector<16x128xf32> to vector<2x8x128xf32>
    %cst = arith.constant dense<0.000000e+00> : vector<8x128xf32>
    %6 = vector.multi_reduction <add>, %5, %cst [0] : vector<2x8x128xf32> to vector<8x128xf32>
    %7 = arith.addf %4, %6 : vector<8x128xf32>
    %c0_4 = arith.constant 0 : index
    %c0_5 = arith.constant 0 : index
    %8 = vector.load %arg3[%c0_4, %c0_5] : memref<8x128xf32, #tpu.memory_space<vmem>>, vector<8x128xf32>
    tpu.vector_store %arg3[%c0_4, %c0_5], %7 {strides = array<i32>} : memref<8x128xf32, #tpu.memory_space<vmem>>, vector<8x128xf32>,
    return
  }
  func.func @transform_0(%arg0: i32, %arg1: i32) -> (i32, i32) {
    %c1_i32 = arith.constant 1 : i32
    %0 = arith.muli %arg0, %c1_i32 : i32
    %1 = arith.addi %0, %arg1 : i32
    %c0_i32 = arith.constant 0 : i32
    %2 = arith.minsi %1, %c0_i32 : i32
    %c0_i32_0 = arith.constant 0 : i32
    %c0_i32_1 = arith.constant 0 : i32
    return %2, %c0_i32_0 : i32, i32
  }
  func.func @transform_1(%arg0: i32, %arg1: i32) -> (i32, i32) {
    %c0_i32 = arith.constant 0 : i32
    %c0_i32_0 = arith.constant 0 : i32
    return %arg0, %c0_i32 : i32, i32
  }
}

</mosaic_0001>

<bundles_post_ra>
// kernel: tpu_custom_call.1
= control target key start
LH: loop header
LB: loop body
LE: loop exit
PB: predicated region body
PF: predicated region fallthrough
CT: control target
= control target key end

     0   :  { %6 = vsyncpa [#allocation3], 0  ;;  %s152_s0 = inlined_call_operand.hbm [shape: f32[16,128], index: 0, kind: input, shape index: {}]   ;;  %s153_s1 = inlined_call_operand.hbm [shape: f32[8,128], index: 1, kind: output, shape index: {}]  }
   0x1   :  { %7 = vsyncpa [#allocation4], 0  ;;  %s114_s6 = smov [#allocation2]   ;;  %s66_s10 = scalar_lea.hbm %s152_s0, 256 }
   0x2   :  { %s19_s7 = sshll.u32 %s114_s6, 4  ;;  %p67_p0 = scmp.ne.s32.totalorder %s152_s0, %s66_s10  ;;  %s20_s7 = int_to_ptr.vmem [resolvable:$true] %s19_s7 }
   0x3   :  { %p70_p1 = scmp.lt.u32.totalorder %s66_s10, %s152_s0 }
   0x5   :  { %p72_p2 = pnand %p70_p1, %p67_p0 }
   0x7   :  { %75 = shalt.err (!%p72_p2)
}
   0x8   :  { %s76_s15 = scalar_lea.vmem %s20_s7, 256  ;;  %p81_p4 = scmp.lt.s32.totalorder %s20_s7, %s20_s7 }
   0x9   :  { %p77_p3 = scmp.ne.s32.totalorder %s20_s7, %s76_s15  ;;  %p82_p5 = scmp.lt.s32.totalorder %s76_s15, %s76_s15 }
   0xb   :  { %p83_p6 = por %p82_p5, %p81_p4 }
   0xd   :  { %p84_p7 = pnand %p83_p6, %p77_p3 }
   0xf   :  { %87 = shalt.err (!%p84_p7)
}
  0x10   :  { %s115_s16 = smov 128   ;;  %s116_s17 = smov 8  }
  0x11   :  { %25 = dma.hbm_to_vmem [thread:$0]  %s152_s0, 256, %s20_s7, [#allocation3], %s115_s16, %s115_s16, %s116_s17  }
  0x12   :  { %110 = dma.done.wait [#allocation3], 256  }
  0x13   :  { %111 = vsyncadd [#allocation3], 4294967040  ;;  %v38_v0 = vld [vmem:[#allocation2] sm:$0xff]  ;;  %v39_v1 = vld [vmem:[#allocation2 + $0x8] sm:$0xff]  ;;  %s117_s20 = smov [#allocation5]  }
  0x14   :  { %s50_s21 = sshll.u32 %s117_s20, 4  ;;  %v41_v2 = vadd.f32 %v39_v1, %v38_v0  ;;  %s51_s21 = int_to_ptr.vmem [resolvable:$true] %s50_s21 }
  0x15   :  { %s88_s22 = scalar_lea.vmem %s51_s21, 128  ;;  %p93_p9 = scmp.lt.s32.totalorder %s51_s21, %s51_s21 }
  0x16   :  { %43 = vst [vmem:[#allocation5] sm:$0xff] %v41_v2  ;;  %p89_p8 = scmp.ne.s32.totalorder %s51_s21, %s88_s22  ;;  %p94_p10 = scmp.lt.s32.totalorder %s88_s22, %s88_s22 }
  0x18   :  { %p95_p11 = por %p94_p10, %p93_p9 }
  0x1a   :  { %p96_p12 = pnand %p95_p11, %p89_p8 }
  0x1c   :  { %99 = shalt.err (!%p96_p12)
}
  0x1d   :  { %s100_s0 = scalar_lea.hbm %s153_s1, 128 }
  0x1e   :  { %p101_p13 = scmp.ne.s32.totalorder %s153_s1, %s100_s0  ;;  %p104_p0 = scmp.lt.u32.totalorder %s100_s0, %s153_s1 }
  0x20   :  { %p106_p1 = pnand %p104_p0, %p101_p13 }
  0x22   :  { %109 = shalt.err (!%p106_p1)
}
  0x23   :  { %53 = dma.vmem_to_hbm [thread:$0]  %s51_s21, 128, %s153_s1, [#allocation4]  }
  0x24   :  { %112 = dma.done.wait [#allocation4], 128  }
  0x25   :  { %113 = vsyncadd [#allocation4], 4294967168 }
  0x26   :  { %57 = vsyncpa [#allocation3], 1 }
  0x27   :  { %58 = vsyncpa [#allocation4], 1 }

</bundles_post_ra>
